<compile_context>
chip_gen: v5e
topology: v5e:2x2
jax: 0.10.0
libtpu: 0.0.40
codegen_flags: <defaults>
</compile_context>

<pallas_src>
import functools

import jax
import jax.numpy as jnp
from jax.experimental import pallas as pl
from jax.experimental.pallas import tpu as pltpu


def _round_up(x, m):
    return ((x + m - 1) // m) * m


def _textcnn_kernel(emb_ref, w0_ref, b0_ref, wl_ref, bl_ref, out_ref,
                    *, fs0, L0, L1, L2, Fp, TB):
    """One batch tile of the TextCNNV1 forward.

    emb_ref : (TB, S, E)   bf16  embedded tokens for this batch tile
    w0_ref  : (fs0*E, Fp)  bf16  conv0 weight in im2col layout, F padded to 128
    b0_ref  : (1, Fp)      f32   conv0 bias (zero padded)
    wl_ref  : (3*Fp, Op)   f32   linear weight^T with 1/L pool scales folded in
    bl_ref  : (1, Op)      f32   linear bias (zero padded)
    out_ref : (TB, Op)     f32
    """
    # im2col: windows[b*L0 + l, k*E + e] = emb[b, l + k, e]
    windows = jnp.concatenate(
        [jnp.concatenate([emb_ref[b, k:k + L0, :] for k in range(fs0)], axis=-1)
         for b in range(TB)],
        axis=0)                                               # (TB*L0, fs0*E) bf16

    # conv0 as a single lane-dense MXU matmul (f32 accumulation) + bias + ReLU.
    conv = jnp.dot(windows, w0_ref[...],
                   preferred_element_type=jnp.float32)        # (TB*L0, Fp)
    r = jnp.maximum(conv + b0_ref[...], 0.0)

    # Prefix-sum pooling.  Reproduces the reference exactly: all three pools
    # average conv0's output; pool1/pool2 just use conv1/conv2's output lengths
    # (L1, L2) as the window.  The 1/L scales are folded into wl on the host,
    # so only sums are needed here (L2 <= L1 <= L0).
    s0_rows, s1_rows, s2_rows = [], [], []
    for b in range(TB):
        base = b * L0
        s2 = jnp.sum(r[base:base + L2], axis=0, keepdims=True)        # (1, Fp)
        if L1 > L2:
            s1 = s2 + jnp.sum(r[base + L2:base + L1], axis=0, keepdims=True)
        else:
            s1 = s2
        if L0 > L1:
            s0 = s1 + jnp.sum(r[base + L1:base + L0], axis=0, keepdims=True)
        else:
            s0 = s1
        s0_rows.append(s0)
        s1_rows.append(s1)
        s2_rows.append(s2)
    S0 = jnp.concatenate(s0_rows, axis=0)                     # (TB, Fp) f32
    S1 = jnp.concatenate(s1_rows, axis=0)
    S2 = jnp.concatenate(s2_rows, axis=0)

    # TODO(synk): dropout is identity in eval mode; training-mode RNG dropout not implemented.

    # cat([pool0, pool1, pool2]) @ W_l.T + b_l as three row-block matmuls
    # against the pre-scaled, lane-padded (3*Fp, Op) weight.
    wl = wl_ref[...]
    out = jnp.dot(S0, wl[0:Fp], preferred_element_type=jnp.float32)
    out = out + jnp.dot(S1, wl[Fp:2 * Fp], preferred_element_type=jnp.float32)
    out = out + jnp.dot(S2, wl[2 * Fp:3 * Fp], preferred_element_type=jnp.float32)
    out_ref[...] = out + bl_ref[...]                          # (TB, Op) lane-dense store


def prepare_params(params, *, filter_sizes, seq_len):
    """One-time weight layout prep, hoisted out of the per-call path."""
    fs0, fs1, fs2 = filter_sizes
    F = params["b0"].shape[0]
    O = params["bl"].shape[0]
    E = params["embedding"].shape[1]
    L0 = seq_len - fs0 + 1
    L1 = seq_len - fs1 + 1
    L2 = seq_len - fs2 + 1
    assert min(L0, L1, L2) >= 1, "sequence shorter than a filter size"
    # The reference's avg_pool1d(conv0_out, kernel_size=Lj).squeeze(-1) only
    # works when there is a single pooling window; assert that configuration.
    assert L0 < 2 * L1 and L0 < 2 * L2, "multi-window avg_pool1d not supported by the reference forward"

    Fp = _round_up(F, 128)   # lane-dense filter dim
    Op = _round_up(O, 128)   # lane-dense output dim

    # conv0 weight (F, 1, fs0, E) -> im2col layout (fs0*E, F), bf16, lane-padded.
    w0 = jnp.transpose(params["w0"][:, 0].reshape(F, fs0 * E))          # (fs0*E, F)
    w0p = jnp.zeros((fs0 * E, Fp), jnp.bfloat16).at[:, :F].set(w0.astype(jnp.bfloat16))
    b0p = jnp.zeros((1, Fp), jnp.float32).at[0, :F].set(params["b0"].astype(jnp.float32))

    # linear weight (O, 3F) -> (3*Fp, Op), pool 1/L scaling folded in, f32.
    wl_t = jnp.transpose(params["wl"]).astype(jnp.float32)              # (3F, O)
    wlp = jnp.zeros((3 * Fp, Op), jnp.float32)
    for j, L in enumerate((L0, L1, L2)):
        wlp = wlp.at[j * Fp:j * Fp + F, :O].set(wl_t[j * F:(j + 1) * F] * (1.0 / L))
    blp = jnp.zeros((1, Op), jnp.float32).at[0, :O].set(params["bl"].astype(jnp.float32))

    return {
        "emb_table": params["embedding"].astype(jnp.bfloat16),   # bf16 gather: half the HBM bytes
        "w0": w0p, "b0": b0p, "wl": wlp, "bl": blp,
        "dims": dict(F=F, O=O, Fp=Fp, Op=Op, L0=L0, L1=L1, L2=L2, fs0=fs0),
    }


def textcnn_forward(text, prepped, *, batch_tile=8):
    """text: (S, B) int32 token ids (torchtext convention, like batch.text)."""
    d = prepped["dims"]
    fs0, L0, L1, L2 = d["fs0"], d["L0"], d["L1"], d["L2"]
    Fp, Op, O = d["Fp"], d["Op"], d["O"]

    # Embedding lookup straight into (B, S, E): transpose the tiny (S, B) id
    # matrix instead of the (B, S, E) activation tensor.
    emb = jnp.take(prepped["emb_table"], text.T, axis=0)      # (B, S, E) bf16
    B, S, E = emb.shape

    # Batch tile: full batch when tiny, otherwise a multiple of 8.  Block is
    # TB*S*E bf16 double-buffered — sized comfortably under v7x's 64 MiB VMEM.
    TB = B if B < batch_tile else batch_tile
    assert TB == B or TB % 8 == 0
    BP = _round_up(B, TB)
    if BP != B:
        emb = jnp.pad(emb, ((0, BP - B), (0, 0), (0, 0)))

    kernel = functools.partial(_textcnn_kernel, fs0=fs0, L0=L0, L1=L1, L2=L2,
                               Fp=Fp, TB=TB)
    out = pl.pallas_call(
        kernel,
        out_shape=jax.ShapeDtypeStruct((BP, Op), jnp.float32),
        grid=(BP // TB,),
        in_specs=[
            pl.BlockSpec((TB, S, E), lambda i: (i, 0, 0)),      # batch-tiled, auto-pipelined
            pl.BlockSpec((fs0 * E, Fp), lambda i: (0, 0)),      # weights stay VMEM-resident
            pl.BlockSpec((1, Fp), lambda i: (0, 0)),
            pl.BlockSpec((3 * Fp, Op), lambda i: (0, 0)),
            pl.BlockSpec((1, Op), lambda i: (0, 0)),
        ],
        out_specs=pl.BlockSpec((TB, Op), lambda i: (i, 0)),
        compiler_params=pltpu.CompilerParams(
            dimension_semantics=("parallel",)),                 # megacore-shardable
    )(emb, prepped["w0"], prepped["b0"], prepped["wl"], prepped["bl"])

    return out[:B, :O]


def textcnn_reference(text, params, *, filter_sizes):
    """Pure-JAX reference reproducing the PyTorch forward (incl. the pooling
    quirk), with emb/w0 rounded to bf16 to match the kernel's input precision."""
    fs0, fs1, fs2 = filter_sizes
    emb_tbl = params["embedding"].astype(jnp.bfloat16).astype(jnp.float32)
    embedded = jnp.take(emb_tbl, text, axis=0)                  # (S, B, E)
    embedded = jnp.transpose(embedded, (1, 0, 2))               # (B, S, E)
    B, S, E = embedded.shape
    L0, L1, L2 = S - fs0 + 1, S - fs1 + 1, S - fs2 + 1
    F = params["b0"].shape[0]

    w0 = params["w0"][:, 0].astype(jnp.bfloat16).astype(jnp.float32).reshape(F, fs0 * E)
    windows = jnp.stack(
        [embedded[:, t:t + fs0, :].reshape(B, fs0 * E) for t in range(L0)], axis=1)
    conv0 = jnp.einsum("blk,fk->bfl", windows, w0) + params["b0"][None, :, None]
    conv0 = jax.nn.relu(conv0)                                  # (B, F, L0)

    pool0 = conv0.mean(axis=-1)
    pool1 = conv0[:, :, :L1].mean(axis=-1)                      # quirk: pools conv0_out
    pool2 = conv0[:, :, :L2].mean(axis=-1)                      # quirk: pools conv0_out
    cat = jnp.concatenate([pool0, pool1, pool2], axis=1)
    return cat @ params["wl"].T + params["bl"]


def init_params(key, *, vocab_size, embedding_dim, padding_idx,
                n_filters, filter_sizes, output_size):
    ks = jax.random.split(key, 9)
    fs0, fs1, fs2 = filter_sizes
    emb = 0.1 * jax.random.normal(ks[0], (vocab_size, embedding_dim), jnp.float32)
    emb = emb.at[padding_idx].set(0.0)                          # padding_idx row zeroed
    params = {
        "embedding": emb,
        "w0": 0.1 * jax.random.normal(ks[1], (n_filters, 1, fs0, embedding_dim), jnp.float32),
        "b0": 0.1 * jax.random.normal(ks[2], (n_filters,), jnp.float32),
        # conv1/conv2 params exist in __init__ but their outputs are unused by
        # the reference forward's final result (only their lengths matter).
        "w1": 0.1 * jax.random.normal(ks[3], (n_filters, 1, fs1, embedding_dim), jnp.float32),
        "b1": 0.1 * jax.random.normal(ks[4], (n_filters,), jnp.float32),
        "w2": 0.1 * jax.random.normal(ks[5], (n_filters, 1, fs2, embedding_dim), jnp.float32),
        "b2": 0.1 * jax.random.normal(ks[6], (n_filters,), jnp.float32),
        "wl": 0.1 * jax.random.normal(ks[7], (output_size, 3 * n_filters), jnp.float32),
        "bl": 0.1 * jax.random.normal(ks[8], (output_size,), jnp.float32),
    }
    return params


if __name__ == "__main__":
    # Small, module-consistent shapes.
    VOCAB, EMB_DIM, PAD_IDX = 50, 32, 0
    N_FILTERS, FILTER_SIZES = 8, (3, 4, 5)
    OUTPUT_SIZE = 4
    SEQ_LEN, BATCH = 16, 2

    key = jax.random.PRNGKey(0)
    pkey, tkey = jax.random.split(key)
    params = init_params(pkey, vocab_size=VOCAB, embedding_dim=EMB_DIM,
                         padding_idx=PAD_IDX, n_filters=N_FILTERS,
                         filter_sizes=FILTER_SIZES, output_size=OUTPUT_SIZE)

    # batch.text: (seq_len, batch) int token ids; sprinkle in padding tokens.
    text = jax.random.randint(tkey, (SEQ_LEN, BATCH), 0, VOCAB, dtype=jnp.int32)
    text = text.at[-2:, :].set(PAD_IDX)

    prepped = prepare_params(params, filter_sizes=FILTER_SIZES, seq_len=SEQ_LEN)
    out = textcnn_forward(text, prepped)
    out = jax.block_until_ready(out)

    ref = textcnn_reference(text, params, filter_sizes=FILTER_SIZES)
    if not jnp.allclose(out, ref, atol=2e-3, rtol=2e-3):
        raise AssertionError("Pallas kernel output does not match reference")

    print("KERNEL_OK")
</pallas_src>

<mosaic_0001>
module attributes {stable_mosaic.version = 11 : i64} {
  func.func @_textcnn_kernel(%arg0: i32, %arg1: memref<2x16x32xbf16, #tpu.memory_space<vmem>>, %arg2: memref<96x128xbf16, #tpu.memory_space<vmem>>, %arg3: memref<1x128xf32, #tpu.memory_space<vmem>>, %arg4: memref<384x128xf32, #tpu.memory_space<vmem>>, %arg5: memref<1x128xf32, #tpu.memory_space<vmem>>, %arg6: memref<2x128xf32, #tpu.memory_space<vmem>>) attributes {dimension_semantics = [#tpu.dimension_semantics<parallel>], iteration_bounds = array<i64: 1>, scalar_prefetch = 0 : i64, scratch_operands = 0 : i64, tpu.core_type = #tpu.core_type<tc>, window_params = [{transform_indices = @transform_0, window_bounds = array<i64: 2, 16, 32>}, {pipeline_mode = #tpu.pipeline_mode<synchronous>, transform_indices = @transform_1, window_bounds = array<i64: 96, 128>}, {pipeline_mode = #tpu.pipeline_mode<synchronous>, transform_indices = @transform_2, window_bounds = array<i64: 1, 128>}, {pipeline_mode = #tpu.pipeline_mode<synchronous>, transform_indices = @transform_3, window_bounds = array<i64: 384, 128>}, {pipeline_mode = #tpu.pipeline_mode<synchronous>, transform_indices = @transform_4, window_bounds = array<i64: 1, 128>}, {transform_indices = @transform_5, window_bounds = array<i64: 2, 128>}]} {
    %c0 = arith.constant 0 : index
    %c0_0 = arith.constant 0 : index
    %c0_1 = arith.constant 0 : index
    %0 = vector.load %arg1[%c0, %c0_0, %c0_1] : memref<2x16x32xbf16, #tpu.memory_space<vmem>>, vector<1x14x32xbf16>
    %1 = vector.shape_cast %0 : vector<1x14x32xbf16> to vector<14x32xbf16>
    %c0_2 = arith.constant 0 : index
    %c1 = arith.constant 1 : index
    %c0_3 = arith.constant 0 : index
    %2 = vector.load %arg1[%c0_2, %c1, %c0_3] : memref<2x16x32xbf16, #tpu.memory_space<vmem>>, vector<1x14x32xbf16>
    %3 = vector.shape_cast %2 : vector<1x14x32xbf16> to vector<14x32xbf16>
    %c0_4 = arith.constant 0 : index
    %c2 = arith.constant 2 : index
    %c0_5 = arith.constant 0 : index
    %4 = vector.load %arg1[%c0_4, %c2, %c0_5] : memref<2x16x32xbf16, #tpu.memory_space<vmem>>, vector<1x14x32xbf16>
    %5 = vector.shape_cast %4 : vector<1x14x32xbf16> to vector<14x32xbf16>
    %6 = tpu.concatenate %1, %3, %5 in 1 : vector<14x32xbf16>, vector<14x32xbf16>, vector<14x32xbf16> -> vector<14x96xbf16>
    %c1_6 = arith.constant 1 : index
    %c0_7 = arith.constant 0 : index
    %c0_8 = arith.constant 0 : index
    %7 = vector.load %arg1[%c1_6, %c0_7, %c0_8] : memref<2x16x32xbf16, #tpu.memory_space<vmem>>, vector<1x14x32xbf16>
    %8 = vector.shape_cast %7 : vector<1x14x32xbf16> to vector<14x32xbf16>
    %c1_9 = arith.constant 1 : index
    %c1_10 = arith.constant 1 : index
    %c0_11 = arith.constant 0 : index
    %9 = vector.load %arg1[%c1_9, %c1_10, %c0_11] : memref<2x16x32xbf16, #tpu.memory_space<vmem>>, vector<1x14x32xbf16>
    %10 = vector.shape_cast %9 : vector<1x14x32xbf16> to vector<14x32xbf16>
    %c1_12 = arith.constant 1 : index
    %c2_13 = arith.constant 2 : index
    %c0_14 = arith.constant 0 : index
    %11 = vector.load %arg1[%c1_12, %c2_13, %c0_14] : memref<2x16x32xbf16, #tpu.memory_space<vmem>>, vector<1x14x32xbf16>
    %12 = vector.shape_cast %11 : vector<1x14x32xbf16> to vector<14x32xbf16>
    %13 = tpu.concatenate %8, %10, %12 in 1 : vector<14x32xbf16>, vector<14x32xbf16>, vector<14x32xbf16> -> vector<14x96xbf16>
    %14 = tpu.concatenate %6, %13 in 0 : vector<14x96xbf16>, vector<14x96xbf16> -> vector<28x96xbf16>
    %c0_15 = arith.constant 0 : index
    %c0_16 = arith.constant 0 : index
    %15 = vector.load %arg2[%c0_15, %c0_16] : memref<96x128xbf16, #tpu.memory_space<vmem>>, vector<96x128xbf16>
    %cst = arith.constant dense<0.000000e+00> : vector<28x128xf32>
    %16 = tpu.matmul %14, %15, %cst {dimension_numbers = #tpu.dot_dimension_numbers<[1], [0], [0], [1], [0, 0, 1, 1], [], []>} : vector<28x96xbf16>, vector<96x128xbf16>, vector<28x128xf32> -> vector<28x128xf32>
    %c0_17 = arith.constant 0 : index
    %c0_18 = arith.constant 0 : index
    %17 = vector.load %arg3[%c0_17, %c0_18] : memref<1x128xf32, #tpu.memory_space<vmem>>, vector<1x128xf32>
    %18 = vector.broadcast %17 : vector<1x128xf32> to vector<28x128xf32>
    %19 = arith.addf %16, %18 : vector<28x128xf32>
    %cst_19 = arith.constant 0.000000e+00 : f32
    %20 = vector.broadcast %cst_19 : f32 to vector<28x128xf32>
    %21 = arith.maximumf %19, %20 : vector<28x128xf32>
    %22 = vector.extract_strided_slice %21 {offsets = [0, 0], sizes = [12, 128], strides = [1, 1]} : vector<28x128xf32> to vector<12x128xf32>
    %cst_20 = arith.constant dense<0.000000e+00> : vector<128xf32>
    %23 = vector.multi_reduction <add>, %22, %cst_20 [0] : vector<12x128xf32> to vector<128xf32>
    %24 = vector.shape_cast %23 : vector<128xf32> to vector<1x128xf32>
    %25 = vector.extract_strided_slice %21 {offsets = [12, 0], sizes = [1, 128], strides = [1, 1]} : vector<28x128xf32> to vector<1x128xf32>
    %cst_21 = arith.constant dense<0.000000e+00> : vector<128xf32>
    %26 = vector.multi_reduction <add>, %25, %cst_21 [0] : vector<1x128xf32> to vector<128xf32>
    %27 = vector.shape_cast %26 : vector<128xf32> to vector<1x128xf32>
    %28 = arith.addf %24, %27 : vector<1x128xf32>
    %29 = vector.extract_strided_slice %21 {offsets = [13, 0], sizes = [1, 128], strides = [1, 1]} : vector<28x128xf32> to vector<1x128xf32>
    %cst_22 = arith.constant dense<0.000000e+00> : vector<128xf32>
    %30 = vector.multi_reduction <add>, %29, %cst_22 [0] : vector<1x128xf32> to vector<128xf32>
    %31 = vector.shape_cast %30 : vector<128xf32> to vector<1x128xf32>
    %32 = arith.addf %28, %31 : vector<1x128xf32>
    %33 = vector.extract_strided_slice %21 {offsets = [14, 0], sizes = [12, 128], strides = [1, 1]} : vector<28x128xf32> to vector<12x128xf32>
    %cst_23 = arith.constant dense<0.000000e+00> : vector<128xf32>
    %34 = vector.multi_reduction <add>, %33, %cst_23 [0] : vector<12x128xf32> to vector<128xf32>
    %35 = vector.shape_cast %34 : vector<128xf32> to vector<1x128xf32>
    %36 = vector.extract_strided_slice %21 {offsets = [26, 0], sizes = [1, 128], strides = [1, 1]} : vector<28x128xf32> to vector<1x128xf32>
    %cst_24 = arith.constant dense<0.000000e+00> : vector<128xf32>
    %37 = vector.multi_reduction <add>, %36, %cst_24 [0] : vector<1x128xf32> to vector<128xf32>
    %38 = vector.shape_cast %37 : vector<128xf32> to vector<1x128xf32>
    %39 = arith.addf %35, %38 : vector<1x128xf32>
    %40 = vector.extract_strided_slice %21 {offsets = [27, 0], sizes = [1, 128], strides = [1, 1]} : vector<28x128xf32> to vector<1x128xf32>
    %cst_25 = arith.constant dense<0.000000e+00> : vector<128xf32>
    %41 = vector.multi_reduction <add>, %40, %cst_25 [0] : vector<1x128xf32> to vector<128xf32>
    %42 = vector.shape_cast %41 : vector<128xf32> to vector<1x128xf32>
    %43 = arith.addf %39, %42 : vector<1x128xf32>
    %44 = tpu.concatenate %32, %43 in 0 : vector<1x128xf32>, vector<1x128xf32> -> vector<2x128xf32>
    %45 = tpu.concatenate %28, %39 in 0 : vector<1x128xf32>, vector<1x128xf32> -> vector<2x128xf32>
    %46 = tpu.concatenate %24, %35 in 0 : vector<1x128xf32>, vector<1x128xf32> -> vector<2x128xf32>
    %c0_26 = arith.constant 0 : index
    %c0_27 = arith.constant 0 : index
    %47 = vector.load %arg4[%c0_26, %c0_27] : memref<384x128xf32, #tpu.memory_space<vmem>>, vector<384x128xf32>
    %48 = vector.extract_strided_slice %47 {offsets = [0, 0], sizes = [128, 128], strides = [1, 1]} : vector<384x128xf32> to vector<128x128xf32>
    %cst_28 = arith.constant dense<0.000000e+00> : vector<2x128xf32>
    %49 = tpu.matmul %44, %48, %cst_28 {dimension_numbers = #tpu.dot_dimension_numbers<[1], [0], [0], [1], [0, 0, 1, 1], [], []>} : vector<2x128xf32>, vector<128x128xf32>, vector<2x128xf32> -> vector<2x128xf32>
    %50 = vector.extract_strided_slice %47 {offsets = [128, 0], sizes = [128, 128], strides = [1, 1]} : vector<384x128xf32> to vector<128x128xf32>
    %cst_29 = arith.constant dense<0.000000e+00> : vector<2x128xf32>
    %51 = tpu.matmul %45, %50, %cst_29 {dimension_numbers = #tpu.dot_dimension_numbers<[1], [0], [0], [1], [0, 0, 1, 1], [], []>} : vector<2x128xf32>, vector<128x128xf32>, vector<2x128xf32> -> vector<2x128xf32>
    %52 = arith.addf %49, %51 : vector<2x128xf32>
    %53 = vector.extract_strided_slice %47 {offsets = [256, 0], sizes = [128, 128], strides = [1, 1]} : vector<384x128xf32> to vector<128x128xf32>
    %cst_30 = arith.constant dense<0.000000e+00> : vector<2x128xf32>
    %54 = tpu.matmul %46, %53, %cst_30 {dimension_numbers = #tpu.dot_dimension_numbers<[1], [0], [0], [1], [0, 0, 1, 1], [], []>} : vector<2x128xf32>, vector<128x128xf32>, vector<2x128xf32> -> vector<2x128xf32>
    %55 = arith.addf %52, %54 : vector<2x128xf32>
    %c0_31 = arith.constant 0 : index
    %c0_32 = arith.constant 0 : index
    %56 = vector.load %arg5[%c0_31, %c0_32] : memref<1x128xf32, #tpu.memory_space<vmem>>, vector<1x128xf32>
    %57 = vector.broadcast %56 : vector<1x128xf32> to vector<2x128xf32>
    %58 = arith.addf %55, %57 : vector<2x128xf32>
    %c0_33 = arith.constant 0 : index
    %c0_34 = arith.constant 0 : index
    %59 = vector.load %arg6[%c0_33, %c0_34] : memref<2x128xf32, #tpu.memory_space<vmem>>, vector<2x128xf32>
    tpu.vector_store %arg6[%c0_33, %c0_34], %58 {strides = array<i32>} : memref<2x128xf32, #tpu.memory_space<vmem>>, vector<2x128xf32>,
    return
  }
  func.func @transform_0(%arg0: i32) -> (i32, i32, i32) {
    %c0_i32 = arith.constant 0 : i32
    %c0_i32_0 = arith.constant 0 : i32
    %c0_i32_1 = arith.constant 0 : i32
    return %arg0, %c0_i32, %c0_i32_0 : i32, i32, i32
  }
  func.func @transform_1(%arg0: i32) -> (i32, i32) {
    %c0_i32 = arith.constant 0 : i32
    %c0_i32_0 = arith.constant 0 : i32
    %c0_i32_1 = arith.constant 0 : i32
    return %c0_i32, %c0_i32_0 : i32, i32
  }
  func.func @transform_2(%arg0: i32) -> (i32, i32) {
    %c0_i32 = arith.constant 0 : i32
    %c0_i32_0 = arith.constant 0 : i32
    %c0_i32_1 = arith.constant 0 : i32
    return %c0_i32, %c0_i32_0 : i32, i32
  }
  func.func @transform_3(%arg0: i32) -> (i32, i32) {
    %c0_i32 = arith.constant 0 : i32
    %c0_i32_0 = arith.constant 0 : i32
    %c0_i32_1 = arith.constant 0 : i32
    return %c0_i32, %c0_i32_0 : i32, i32
  }
  func.func @transform_4(%arg0: i32) -> (i32, i32) {
    %c0_i32 = arith.constant 0 : i32
    %c0_i32_0 = arith.constant 0 : i32
    %c0_i32_1 = arith.constant 0 : i32
    return %c0_i32, %c0_i32_0 : i32, i32
  }
  func.func @transform_5(%arg0: i32) -> (i32, i32) {
    %c0_i32 = arith.constant 0 : i32
    %c0_i32_0 = arith.constant 0 : i32
    return %arg0, %c0_i32 : i32, i32
  }
}

</mosaic_0001>

<bundles_post_ra>
// kernel: tpu_custom_call.1
= control target key start
LH: loop header
LB: loop body
LE: loop exit
PB: predicated region body
PF: predicated region fallthrough
CT: control target
= control target key end

     0   :  { %10 = vsyncpa [#allocation3], 0  ;;  %s644_s0 = inlined_call_operand.hbm [shape: bf16[2,16,32], index: 0, kind: input, shape index: {}]   ;;  %s645_s1 = inlined_call_operand.hbm [shape: bf16[96,128], index: 1, kind: input, shape index: {}]   ;;  %s646_s2 = inlined_call_operand.vmem [shape: f32[1,128], index: 2, kind: input, shape index: {}]   ;;  %s647_s3 = inlined_call_operand.hbm [shape: f32[384,128], index: 3, kind: input, shape index: {}]   ;;  %s648_s4 = inlined_call_operand.vmem [shape: f32[1,128], index: 4, kind: input, shape index: {}]   ;;  %s649_s5 = inlined_call_operand.hbm [shape: f32[2,128], index: 5, kind: output, shape index: {}]  }
   0x1   :  { %11 = vsyncpa [#allocation6], 0 }
   0x2   :  { %12 = vsyncpa [#allocation4], 0  ;;  %s30_s20 = sshll.u32 %s645_s1, 4  ;;  %s579_s21 = smov [#allocation5]   ;;  %s31_s20 = int_to_ptr.hbm [resolvable:$true] %s30_s20 }
   0x3   :  { %s32_s22 = sshll.u32 %s579_s21, 4  ;;  %s17_s25 = sshll.u32 %s644_s0, 4  ;;  %s33_s22 = int_to_ptr.vmem [resolvable:$true] %s32_s22  ;;  %s18_s25 = int_to_ptr.hbm [resolvable:$true] %s17_s25 }
   0x4   :  { %s580_s26 = smov 64   ;;  %s581_s27 = smov 4  }
   0x5   :  { %38 = dma.hbm_to_vmem [thread:$0]  %s31_s20, 768, %s33_s22, [#allocation6], %s580_s26, %s580_s26, %s581_s27  }
   0x6   :  { %s582_s28 = smov [#allocation2]   ;;  %s45_s1 = sshll.u32 %s647_s3, 4  ;;  %s46_s1 = int_to_ptr.hbm [resolvable:$true] %s45_s1 }
   0x7   :  { %s19_s29 = sshll.u32 %s582_s28, 4  ;;  %s583_s7 = smov [#allocation7]   ;;  %s20_s29 = int_to_ptr.vmem [resolvable:$true] %s19_s29 }
   0x8   :  { %25 = dma.hbm_to_vmem [thread:$0]  %s18_s25, 256, %s20_s29, [#allocation3], %s580_s26, %s580_s26, %s581_s27  }
   0x9   :  { %s47_s8 = sshll.u32 %s583_s7, 4  ;;  %s584_s0 = smov 128   ;;  %s48_s8 = int_to_ptr.vmem [resolvable:$true] %s47_s8 }
   0xa   :  { %s585_s9 = smov 8  }
   0xb   :  { %53 = dma.hbm_to_vmem [thread:$0]  %s46_s1, 6144, %s48_s8, [#allocation6], %s584_s0, %s584_s0, %s585_s9  }
   0xc   :  { %573 = dma.done.wait [#allocation3], 256  }
   0xd   :  { %574 = vsyncadd [#allocation3], 4294967040 }
   0xe   :  { %575 = dma.done.wait [#allocation6], 6912  }
   0xf   :  { %576 = vsyncadd [#allocation6], 4294960384  ;;  %v447_v0 = vld [vmem:[#allocation2 + $0x8] sm:$0xff]   ;;  %v443_v1 = vld [vmem:[#allocation2] sm:$0xff]   ;;  %s586_s3 = smov 32   ;;  %vm96_vm0 = vcmask 261120  }
  0x10   :  { %v117_v2 = vshrl.u32 %v447_v0, 16  ;;  %v119_v3 = vshll.u32 %v447_v0, 16  ;;  %v82_v4 = vshrl.u32 %v443_v1, 16  ;;  %v84_v5 = vshll.u32 %v443_v1, 16  ;;  %v453_v6 = vld [vmem:[#allocation2 + $0x8] sm:$0xf0] }
  0x11   :  { %v441_v7 = vld [vmem:[#allocation5 + $0x28] sm:$0xff]  ;;  %v454_v10 = vld [vmem:[#allocation2 + $0x8] sm:$0xe]  ;;  %v450_v11 = vld [vmem:[#allocation2] sm:$0xf0]  ;;  %vm100_vm1 = vcmask 523264  }
  0x12   :  { %v121_v8 = vrot.slane %v119_v3, 1  ;;  %v86_v9 = vrot.slane %v84_v5, 1  ;;  %v451_v12 = vld [vmem:[#allocation2] sm:$0xe]  ;;  %200 = vmatpush.bf16.msra.mxu0 %v441_v7  ;;  %v440_v13 = vld [vmem:[#allocation5 + $0x20] sm:$0xff]  ;;  %v455_v16 = vor.u32 %v454_v10, %v453_v6  ;;  %v439_v18 = vld [vmem:[#allocation5 + $0x18] sm:$0xff] }
  0x13   :  { %v452_v17 = vor.u32 %v451_v12, %v450_v11  ;;  %v438_v21 = vld [vmem:[#allocation5 + $0x10] sm:$0xff]  ;;  %v437_v22 = vld [vmem:[#allocation5 + $0x8] sm:$0xff]  ;;  %v436_v23 = vld [vmem:[#allocation5] sm:$0xff]  ;;  %vm138_vm2 = vcmask 1046528   ;;  %vm193_vm3 = vcmask 785408   ;;  %vm221_vm4 = vcmask 1043456  }
  0x14   :  { %v122_v14 = vor.u32 %v121_v8, %v117_v2  ;;  %v87_v15 = vor.u32 %v86_v9, %v82_v4  ;;  %v128_v19 = vrot.slane %v455_v16, 1  ;;  %v462_v26 = vld [vmem:[#allocation2 + $0x8] sm:$0xf]   ;;  %v465_v27 = vld [vmem:[#allocation2 + $0x8] sm:$0x70]  ;;  %v324_v40 = vld [vmem:[#allocation7 + $0x178] sm:$0xff] }
  0x15   :  { %v93_v20 = vrot.slane %v452_v17, 1  ;;  %v458_v28 = vld [vmem:[#allocation2] sm:$0xf]   ;;  %v464_v29 = vld [vmem:[#allocation2] sm:$0x70]  ;;  %v463_v30 = vor.u32 %v465_v27, %v462_v26  ;;  %365 = vmatpush.msra.mxu3 %v324_v40  ;;  %v323_v41 = vld [vmem:[#allocation7 + $0x170] sm:$0xff] }
  0x16   :  { %123 = vrot.lane.b32.xlu0 %v122_v14, %s586_s3  ;;  %88 = vrot.lane.b32.xlu1 %v87_v15, %s586_s3  ;;  %v459_v31 = vor.u32 %v464_v29, %v458_v28  ;;  %v308_v42 = vld [vmem:[#allocation7 + $0xf8] sm:$0xff]  ;;  %v322_v43 = vld [vmem:[#allocation7 + $0x168] sm:$0xff]  ;;  %v307_v44 = vld [vmem:[#allocation7 + $0xf0] sm:$0xff]  ;;  %vm239_vm5 = vcmask 1041408   ;;  %vm267_vm6 = vcmask 1040384   ;;  %s587_s13 = smov [#allocation8]  }
  0x17   :  { %201 = vmatpush.bf16.msra.mxu0 %v440_v13  ;;  %366 = vmatpush.msra.mxu3 %v323_v41  ;;  %v292_v45 = vld [vmem:[#allocation7 + $0x78] sm:$0xff]  ;;  %v321_v46 = vld [vmem:[#allocation7 + $0x160] sm:$0xff]  ;;  %v306_v47 = vld [vmem:[#allocation7 + $0xe8] sm:$0xff]  ;;  %s397_s14 = sshll.u32 %s587_s13, 4  ;;  %s399_s17 = sshll.u32 %s649_s5, 4  ;;  %s398_s14 = int_to_ptr.vmem [resolvable:$true] %s397_s14  ;;  %s400_s17 = int_to_ptr.hbm [resolvable:$true] %s399_s17 }
  0x18   :  { %325 = vmatpush.msra.mxu1 %v308_v42  ;;  %345 = vmatpush.msra.mxu2 %v292_v45  ;;  %v291_v48 = vld [vmem:[#allocation7 + $0x70] sm:$0xff]  ;;  %v320_v49 = vld [vmem:[#allocation7 + $0x158] sm:$0xff]  ;;  %v305_v50 = vld [vmem:[#allocation7 + $0xe0] sm:$0xff] }
  0x19   :  { %367 = vmatpush.msra.mxu3 %v322_v43  ;;  %v290_v51 = vld [vmem:[#allocation7 + $0x68] sm:$0xff]  ;;  %v319_v52 = vld [vmem:[#allocation7 + $0x150] sm:$0xff]  ;;  %v304_v53 = vld [vmem:[#allocation7 + $0xd8] sm:$0xff] }
  0x1a   :  { %326 = vmatpush.msra.mxu1 %v307_v44  ;;  %346 = vmatpush.msra.mxu2 %v291_v48  ;;  %v289_v54 = vld [vmem:[#allocation7 + $0x60] sm:$0xff]  ;;  %v318_v55 = vld [vmem:[#allocation7 + $0x148] sm:$0xff]  ;;  %v303_v56 = vld [vmem:[#allocation7 + $0xd0] sm:$0xff] }
  0x1b   :  { %202 = vmatpush.bf16.msra.mxu0 %v439_v18  ;;  %368 = vmatpush.msra.mxu3 %v321_v46  ;;  %v288_v57 = vld [vmem:[#allocation7 + $0x58] sm:$0xff]  ;;  %v317_v58 = vld [vmem:[#allocation7 + $0x140] sm:$0xff]  ;;  %v302_v60 = vld [vmem:[#allocation7 + $0xc8] sm:$0xff] }
  0x1c   :  { %327 = vmatpush.msra.mxu1 %v306_v47  ;;  %347 = vmatpush.msra.mxu2 %v290_v51  ;;  %v287_v61 = vld [vmem:[#allocation7 + $0x50] sm:$0xff]  ;;  %v316_v62 = vld [vmem:[#allocation7 + $0x138] sm:$0xff]  ;;  %v301_v63 = vld [vmem:[#allocation7 + $0xc0] sm:$0xff] }
  0x1d   :  { %369 = vmatpush.msra.mxu3 %v320_v49  ;;  %v286_v0 = vld [vmem:[#allocation7 + $0x48] sm:$0xff]  ;;  %v315_v1 = vld [vmem:[#allocation7 + $0x130] sm:$0xff]  ;;  %v300_v2 = vld [vmem:[#allocation7 + $0xb8] sm:$0xff] }
  0x1e   :  { %129 = vrot.lane.b32.xlu0 %v128_v19, %s580_s26  ;;  %94 = vrot.lane.b32.xlu1 %v93_v20, %s580_s26  ;;  %v285_v3 = vld [vmem:[#allocation7 + $0x40] sm:$0xff]  ;;  %v314_v4 = vld [vmem:[#allocation7 + $0x128] sm:$0xff]  ;;  %v299_v5 = vld [vmem:[#allocation7 + $0xb0] sm:$0xff] }
  0x1f   :  { %203 = vmatpush.bf16.msra.mxu0 %v438_v21  ;;  %328 = vmatpush.msra.mxu1 %v305_v50  ;;  %v284_v6 = vld [vmem:[#allocation7 + $0x38] sm:$0xff]  ;;  %v475_v7 = vld [vmem:[%s646_s2] ss:$0 sm:$0xff]  ;;  %v298_v9 = vld [vmem:[#allocation7 + $0xa8] sm:$0xff] }
  0x20   :  { %370 = vmatpush.msra.mxu3 %v319_v52  ;;  %348 = vmatpush.msra.mxu2 %v289_v54  ;;  %v313_v8 = vld [vmem:[#allocation7 + $0x120] sm:$0xff]  ;;  %v283_v10 = vld [vmem:[#allocation7 + $0x30] sm:$0xff]  ;;  %v312_v11 = vld [vmem:[#allocation7 + $0x118] sm:$0xff] }
  0x21   :  { %329 = vmatpush.msra.mxu1 %v304_v53  ;;  %v297_v13 = vld [vmem:[#allocation7 + $0xa0] sm:$0xff]  ;;  %v282_v14 = vld [vmem:[#allocation7 + $0x28] sm:$0xff]  ;;  %v311_v17 = vld [vmem:[#allocation7 + $0x110] sm:$0xff] }
  0x22   :  { %371 = vmatpush.msra.mxu3 %v318_v55  ;;  %349 = vmatpush.msra.mxu2 %v288_v57  ;;  %v296_v18 = vld [vmem:[#allocation7 + $0x98] sm:$0xff]  ;;  %v281_v19 = vld [vmem:[#allocation7 + $0x20] sm:$0xff]  ;;  %v310_v21 = vld [vmem:[#allocation7 + $0x108] sm:$0xff] }
  0x23   :  { %204 = vmatpush.bf16.msra.mxu0 %v437_v22  ;;  %330 = vmatpush.msra.mxu1 %v303_v56  ;;  %v295_v22 = vld [vmem:[#allocation7 + $0x90] sm:$0xff]  ;;  %v309_v26 = vld [vmem:[#allocation7 + $0x100] sm:$0xff]  ;;  %v294_v29 = vld [vmem:[#allocation7 + $0x88] sm:$0xff] }
  0x24   :  { %372 = vmatpush.msra.mxu3 %v317_v58  ;;  %350 = vmatpush.msra.mxu2 %v287_v61 }
  0x25   :  { %331 = vmatpush.msra.mxu1 %v302_v60 }
  0x26   :  { %373 = vmatpush.msra.mxu3 %v316_v62  ;;  %351 = vmatpush.msra.mxu2 %v286_v0 }
  0x27   :  { %205 = vmatpush.bf16.msra.mxu0 %v436_v23  ;;  %332 = vmatpush.msra.mxu1 %v301_v63  ;;  %v280_v23 = vld [vmem:[#allocation7 + $0x18] sm:$0xff] }
  0x28   :  { %374 = vmatpush.msra.mxu3 %v315_v1  ;;  %352 = vmatpush.msra.mxu2 %v285_v3 }
  0x29   :  { %333 = vmatpush.msra.mxu1 %v300_v2 }
  0x2a   :  { %375 = vmatpush.msra.mxu3 %v314_v4  ;;  %353 = vmatpush.msra.mxu2 %v284_v6 }
  0x2b   :  { %334 = vmatpush.msra.mxu1 %v299_v5 }
  0x2c   :  { %376 = vmatpush.msra.mxu3 %v313_v8  ;;  %354 = vmatpush.msra.mxu2 %v283_v10  ;;  %v476_v10 = vld [vmem:[%s648_s4] ss:$0 sm:$0xff] }
  0x2d   :  { %335 = vmatpush.msra.mxu1 %v298_v9 }
  0x2e   :  { %377 = vmatpush.msra.mxu3 %v312_v11  ;;  %355 = vmatpush.msra.mxu2 %v282_v14 }
  0x2f   :  { %336 = vmatpush.msra.mxu1 %v297_v13 }
  0x30   :  { %378 = vmatpush.msra.mxu3 %v311_v17  ;;  %356 = vmatpush.msra.mxu2 %v281_v19 }
  0x31   :  { %337 = vmatpush.msra.mxu1 %v296_v18 }
  0x32   :  { %379 = vmatpush.msra.mxu3 %v310_v21  ;;  %357 = vmatpush.msra.mxu2 %v280_v23 }
  0x33   :  { %338 = vmatpush.msra.mxu1 %v295_v22 }
  0x34   :  { %380 = vmatpush.msra.mxu3 %v309_v26 }
  0x35   :  { %339 = vmatpush.msra.mxu1 %v294_v29 }
  0x88   :  { %v124_v24 = vpop.permute.xlu0 %123  ;;  %v89_v25 = vpop.permute.xlu1 %88 }
  0x89   :  { %v133_v32 = vsel %vm96_vm0, %v463_v30, %v124_v24  ;;  %v99_v36 = vsel %vm96_vm0, %v459_v31, %v89_v25  ;;  %v279_v30 = vld [vmem:[#allocation7 + $0x10] sm:$0xff]  ;;  %v293_v31 = vld [vmem:[#allocation7 + $0x80] sm:$0xff] }
  0x8a   :  { %358 = vmatpush.msra.mxu2 %v279_v30  ;;  %340 = vmatpush.msra.mxu1 %v293_v31 }
  0x90   :  { %v130_v33 = vpop.permute.xlu0 %129  ;;  %v95_v34 = vpop.permute.xlu1 %94 }
  0x91   :  { %v135_v35 = vsel %vm100_vm1, %v133_v32, %v130_v33  ;;  %v102_v38 = vsel %vm100_vm1, %v99_v36, %v95_v34  ;;  %v278_v32 = vld [vmem:[#allocation7 + $0x8] sm:$0xff] }
  0x92   :  { %v137_v37 = vrot.slane %v135_v35, 1  ;;  %359 = vmatpush.msra.mxu2 %v278_v32  ;;  %v277_v35 = vld [vmem:[#allocation7] sm:$0xff] }
  0x94   :  { %v140_v39 = vsel %vm138_vm2, %v102_v38, %v137_v37  ;;  %360 = vmatpush.msra.mxu2 %v277_v35 }
  0x95   :  { %434 = vmatmul.msk.bf16.vlgmr.msra.gmra.mxu0 %vm193_vm3, %v140_v39 }
  0xa5   :  { %435 = vmatmul.msk.bf16.gmra.mxu0 %vm193_vm3, %v137_v37 }
 0x112   :  { %v207_v59 = vpop.f32.mrf.mxu0 }
 0x113   :  { %v208_v15 = vadd.f32 %v475_v7, %v207_v59 }
 0x115   :  { %v217_v24 = vmax.f32 %v208_v15, 0.0 }
 0x11a   :  { %v209_v12 = vpop.f32.mrf.mxu0 }
 0x11b   :  { %v210_v16 = vadd.f32 %v475_v7, %v209_v12 }
 0x11d   :  { %v218_v20 = vmax.f32 %v210_v16, 0.0 }
 0x11f   :  { %v222_v25 = vsel %vm221_vm4, %v218_v20, 0.0  ;;  %v240_v44 = vrot.slane %v218_v20, 6  ;;  %v233_v59 = vrot.slane %v218_v20, 1 }
 0x120   :  { %v223_v27 = vadd.f32 %v222_v25, %v217_v24 }
 0x122   :  { %v212_v28 = vpop.f32.mrf.mxu0  ;;  %v224_v33 = vrot.slane %v223_v27, 4 }
 0x123   :  { %v213_v34 = vadd.f32 %v475_v7, %v212_v28 }
 0x124   :  { %v225_v36 = vadd.f32 %v224_v33, %v223_v27 }
 0x125   :  { %v219_v37 = vmax.f32 %v213_v34, 0.0 }
 0x126   :  { %v226_v41 = vrot.slane %v225_v36, 2 }
 0x127   :  { %v241_v42 = vrot.slane %v219_v37, 6 }
 0x128   :  { %v227_v46 = vadd.f32 %v226_v41, %v225_v36 }
 0x129   :  { %v242_v47 = vsel %vm239_vm5, %v240_v44, %v241_v42 }
 0x12a   :  { %v214_v38 = vpop.f32.mrf.mxu0  ;;  %v228_v50 = vrot.slane %v227_v46, 1 }
 0x12b   :  { %v215_v39 = vadd.f32 %v475_v7, %v214_v38 }
 0x12c   :  { %v229_v53 = vadd.f32 %v228_v50, %v227_v46 }
 0x12d   :  { %v220_v40 = vmax.f32 %v215_v39, 0.0 }
 0x12e   :  { %v231_v57 = vadd.f32 %v229_v53, %v218_v20 }
 0x12f   :  { %v243_v43 = vrot.slane %v220_v40, 6  ;;  %v258_v60 = vrot.slane %v220_v40, 1 }
 0x130   :  { %v235_v63 = vadd.f32 %v233_v59, %v231_v57  ;;  %v270_v0 = vrot.slane %v231_v57, 4 }
 0x131   :  { %v244_v45 = vsel %vm239_vm5, %v241_v42, %v243_v43 }
 0x132   :  { %v247_v48 = vsel %vm221_vm4, %v244_v45, 0.0  ;;  %v262_v4 = vrot.slane %v235_v63, 4 }
 0x133   :  { %v248_v49 = vadd.f32 %v247_v48, %v242_v47 }
 0x135   :  { %v249_v51 = vrot.slane %v248_v49, 4 }
 0x137   :  { %v250_v52 = vadd.f32 %v249_v51, %v248_v49 }
 0x139   :  { %v251_v54 = vrot.slane %v250_v52, 2 }
 0x13b   :  { %v252_v55 = vadd.f32 %v251_v54, %v250_v52 }
 0x13d   :  { %v253_v56 = vrot.slane %v252_v55, 1 }
 0x13f   :  { %v254_v58 = vadd.f32 %v253_v56, %v252_v55 }
 0x141   :  { %v276_v61 = vsel %vm267_vm6, %v229_v53, %v254_v58  ;;  %v256_v62 = vadd.f32 %v254_v58, %v220_v40 }
 0x142   :  { %381 = vmatmul.f32.vlgmr.msra.gmra.mxu3 %v276_v61 }
 0x143   :  { %v273_v1 = vrot.slane %v256_v62, 1  ;;  %v260_v2 = vadd.f32 %v258_v60, %v256_v62 }
 0x145   :  { %v275_v3 = vsel %vm267_vm6, %v270_v0, %v273_v1  ;;  %v265_v5 = vrot.slane %v260_v2, 1 }
 0x146   :  { %341 = vmatmul.f32.vlgmr.msra.gmra.mxu1 %v275_v3 }
 0x147   :  { %v268_v6 = vsel %vm267_vm6, %v262_v4, %v265_v5 }
 0x148   :  { %361 = vmatmul.f32.vlgmr.msra.gmra.mxu2 %v268_v6 }
 0x1c3   :  { %v342_v7 = vpop.f32.mrf.mxu1 }
 0x1c5   :  { %v382_v11 = vpop.f32.mrf.mxu3 }
 0x1cb   :  { %v362_v8 = vpop.f32.mrf.mxu2 }
 0x1cc   :  { %v363_v9 = vadd.f32 %v362_v8, %v342_v7 }
 0x1ce   :  { %v385_v12 = vadd.f32 %v382_v11, %v363_v9 }
 0x1d0   :  { %v390_v13 = vadd.f32 %v476_v10, %v385_v12 }
 0x1d2   :  { %391 = vst [vmem:[#allocation8] sm:$0x3] %v390_v13 }
 0x1d3   :  { %402 = dma.vmem_to_hbm [thread:$0]  %s398_s14, 32, %s400_s17, [#allocation4]  }
 0x1d4   :  { %577 = dma.done.wait [#allocation4], 32  }
 0x1d5   :  { %578 = vsyncadd [#allocation4], 4294967264 }
 0x1d6   :  { %407 = vsyncpa [#allocation3], 1 }
 0x1d7   :  { %408 = vsyncpa [#allocation6], 1 }
 0x1d8   :  { %409 = vsyncpa [#allocation4], 1 }

</bundles_post_ra>
